<compile_context>
chip_gen: v6e
topology: v6e:2x2x1
jax: 0.10.0
libtpu: 0.0.40
codegen_flags: <defaults>
</compile_context>

<pallas_src>
import jax
import jax.numpy as jnp
from jax.experimental import pallas as pl
from jax.experimental.pallas import tpu as pltpu


# ------------------------- single-step Pallas kernel ------------------------

def decoder_step_kernel(seq_ref, embT_ref, h_ref, c_ref, whh_ref, b_ref,
                        wfc_ref, bfc_ref, y_ref, hout_ref, cout_ref, xg_ref):
    """One LSTM cell step with folded embedding + final linear projection.

    seq_ref : (B,)     int32 token ids (SMEM)
    embT_ref: (L, 4H)  folded table Embedding @ W_ih^T  (f32, lane-dense rows)
    h_ref   : (B, H)   previous hidden state
    c_ref   : (B, H)   previous cell state
    whh_ref : (H, 4H)  W_hh^T        (f32 or bf16)
    b_ref   : (1, 4H)  b_ih + b_hh   (f32)
    wfc_ref : (H, L)   fc_final.weight^T (f32 or bf16)
    bfc_ref : (1, L)   fc_final.bias
    y_ref   : (B, L)   logits (lane-dense output)
    hout_ref: (B, H)   new hidden state (aliased with h input)
    cout_ref: (B, H)   new cell state   (aliased with c input)
    xg_ref  : (B, 4H)  VMEM scratch for the gathered folded-embedding rows
    """
    B, H = h_ref.shape
    L = embT_ref.shape[0]

    # Lane-dense gather of the folded embedding rows (each row is 4H lanes).
    for bi in range(B):
        idx = jnp.clip(seq_ref[bi], 0, L - 1)          # clamp: no OOB VMEM reads
        xg_ref[pl.ds(bi, 1), :] = embT_ref[pl.ds(idx, 1), :]

    h = h_ref[...]
    c = c_ref[...]

    # Gates: gathered x-contribution + recurrent matmul (K = H) + bias.
    gates = (xg_ref[...]
             + jnp.dot(h.astype(whh_ref.dtype), whh_ref[...],
                       preferred_element_type=jnp.float32)
             + b_ref[...])                                          # (B, 4H) f32

    # Full-vreg activations (4H == 128 lanes): one sigmoid + one tanh over the
    # whole tile, lane-mask select for the cell-candidate chunk.
    lane = jax.lax.broadcasted_iota(jnp.int32, gates.shape, dimension=1)
    is_cand = jnp.logical_and(lane >= 2 * H, lane < 3 * H)
    act = jnp.where(is_cand, jnp.tanh(gates), jax.nn.sigmoid(gates))

    i_g = act[:, 0 * H:1 * H]
    f_g = act[:, 1 * H:2 * H]
    g_g = act[:, 2 * H:3 * H]
    o_g = act[:, 3 * H:4 * H]

    c_new = f_g * c + i_g * g_g
    h_new = o_g * jnp.tanh(c_new)

    hout_ref[...] = h_new
    cout_ref[...] = c_new

    # dropout(p) is identity in eval mode.
    y_ref[...] = (jnp.dot(h_new.astype(wfc_ref.dtype), wfc_ref[...],
                          preferred_element_type=jnp.float32) + bfc_ref[...])


# --------------------- fused multi-timestep decode kernel -------------------

def decoder_seq_kernel(tokens_ref, embT_ref, whh_ref, b_ref, wfc_ref, bfc_ref,
                       h0_ref, c0_ref, y_ref, hT_ref, cT_ref,
                       h_sc, c_sc, xg_ref):
    """T fused decode steps.  grid=(T,), weights VMEM-resident, state in scratch.

    tokens_ref: (T, B) int32 scalar-prefetched token ids (SMEM)
    y_ref     : (1, B, L) per-step logits tile (t-th block of a (T, B, L) output)
    hT_ref/cT_ref: (B, H) final state (written on the last step only)
    h_sc/c_sc : (B, H) VMEM scratch carrying the recurrent state across steps
    """
    t = pl.program_id(0)
    B, H = h_sc.shape
    L = embT_ref.shape[0]

    @pl.when(t == 0)
    def _():
        h_sc[...] = h0_ref[...]
        c_sc[...] = c0_ref[...]

    # Lane-dense gather of folded-embedding rows for this timestep.
    for bi in range(B):
        idx = jnp.clip(tokens_ref[t, bi], 0, L - 1)
        xg_ref[pl.ds(bi, 1), :] = embT_ref[pl.ds(idx, 1), :]

    h = h_sc[...]
    c = c_sc[...]

    gates = (xg_ref[...]
             + jnp.dot(h.astype(whh_ref.dtype), whh_ref[...],
                       preferred_element_type=jnp.float32)
             + b_ref[...])

    lane = jax.lax.broadcasted_iota(jnp.int32, gates.shape, dimension=1)
    is_cand = jnp.logical_and(lane >= 2 * H, lane < 3 * H)
    act = jnp.where(is_cand, jnp.tanh(gates), jax.nn.sigmoid(gates))

    i_g = act[:, 0 * H:1 * H]
    f_g = act[:, 1 * H:2 * H]
    g_g = act[:, 2 * H:3 * H]
    o_g = act[:, 3 * H:4 * H]

    c_new = f_g * c + i_g * g_g
    h_new = o_g * jnp.tanh(c_new)

    h_sc[...] = h_new
    c_sc[...] = c_new

    y_ref[0] = (jnp.dot(h_new.astype(wfc_ref.dtype), wfc_ref[...],
                        preferred_element_type=jnp.float32) + bfc_ref[...])

    @pl.when(t == pl.num_programs(0) - 1)
    def _():
        hT_ref[...] = h_new
        cT_ref[...] = c_new


# ------------------------------- wrappers ------------------------------------

def _forward_impl(current_seq, h2, c2, params):
    """Single decode step matching the module forward.
    current_seq: (B,) int ; h2, c2: (1, B, H) f32 -> (y (1,B,L), (h2', c2'))."""
    embT = params["emb_wih_t"]      # (L, 4H) f32
    whh_t = params["whh_t"]         # (H, 4H)
    b = params["b"]                 # (1, 4H)
    wfc_t = params["wfc_t"]         # (H, L)
    bfc = params["bfc"]             # (1, L)

    B = current_seq.shape[0]
    H = whh_t.shape[0]
    L = wfc_t.shape[1]

    h = h2.reshape(B, H)
    c = c2.reshape(B, H)

    smem = pl.BlockSpec(memory_space=pltpu.MemorySpace.SMEM)
    vmem = pl.BlockSpec(memory_space=pltpu.MemorySpace.VMEM)

    y, h_new, c_new = pl.pallas_call(
        decoder_step_kernel,
        out_shape=(
            jax.ShapeDtypeStruct((B, L), jnp.float32),
            jax.ShapeDtypeStruct((B, H), jnp.float32),
            jax.ShapeDtypeStruct((B, H), jnp.float32),
        ),
        in_specs=[smem, vmem, vmem, vmem, vmem, vmem, vmem, vmem],
        out_specs=(vmem, vmem, vmem),
        scratch_shapes=[pltpu.VMEM((B, 4 * H), jnp.float32)],
        # In-place recurrent state update: h (input 2) -> h_new (output 1),
        # c (input 3) -> c_new (output 2).
        input_output_aliases={2: 1, 3: 2},
    )(current_seq.astype(jnp.int32), embT, h, c, whh_t, b, wfc_t, bfc)

    return y.reshape(1, B, L), (h_new.reshape(1, B, H), c_new.reshape(1, B, H))


def _decode_seq_impl(tokens, h2, c2, params):
    """T fused decode steps (teacher-forced token sequence).
    tokens: (T, B) int ; h2, c2: (1, B, H) -> (y (T,1,B,L), (hT, cT))."""
    embT = params["emb_wih_t"]
    whh_t = params["whh_t"]
    b = params["b"]
    wfc_t = params["wfc_t"]
    bfc = params["bfc"]

    T, B = tokens.shape
    H = whh_t.shape[0]
    L = wfc_t.shape[1]

    h0 = h2.reshape(B, H)
    c0 = c2.reshape(B, H)

    grid_spec = pltpu.PrefetchScalarGridSpec(
        num_scalar_prefetch=1,
        grid=(T,),
        in_specs=[
            pl.BlockSpec((L, 4 * H), lambda t, tok: (0, 0)),   # embT  (resident)
            pl.BlockSpec((H, 4 * H), lambda t, tok: (0, 0)),   # whh_t (resident)
            pl.BlockSpec((1, 4 * H), lambda t, tok: (0, 0)),   # b
            pl.BlockSpec((H, L), lambda t, tok: (0, 0)),       # wfc_t (resident)
            pl.BlockSpec((1, L), lambda t, tok: (0, 0)),       # bfc
            pl.BlockSpec((B, H), lambda t, tok: (0, 0)),       # h0
            pl.BlockSpec((B, H), lambda t, tok: (0, 0)),       # c0
        ],
        out_specs=(
            pl.BlockSpec((1, B, L), lambda t, tok: (t, 0, 0)),  # per-step logits
            pl.BlockSpec((B, H), lambda t, tok: (0, 0)),        # final h
            pl.BlockSpec((B, H), lambda t, tok: (0, 0)),        # final c
        ),
        scratch_shapes=[
            pltpu.VMEM((B, H), jnp.float32),        # h carry
            pltpu.VMEM((B, H), jnp.float32),        # c carry
            pltpu.VMEM((B, 4 * H), jnp.float32),    # gathered folded-embedding rows
        ],
    )

    y, hT, cT = pl.pallas_call(
        decoder_seq_kernel,
        out_shape=(
            jax.ShapeDtypeStruct((T, B, L), jnp.float32),
            jax.ShapeDtypeStruct((B, H), jnp.float32),
            jax.ShapeDtypeStruct((B, H), jnp.float32),
        ),
        grid_spec=grid_spec,
        compiler_params=pltpu.CompilerParams(
            dimension_semantics=("arbitrary",)),    # serial recurrence over time
    )(tokens.astype(jnp.int32), embT, whh_t, b, wfc_t, bfc, h0, c0)

    return y.reshape(T, 1, B, L), (hT.reshape(1, B, H), cT.reshape(1, B, H))


decoder_model_batch_forward = jax.jit(_forward_impl)
decoder_model_batch_decode = jax.jit(_decode_seq_impl)


# -------------------------- parameter creation ------------------------------

def make_params(key, loc_size, hidden_size, param_dtype=jnp.float32):
    """param_dtype applies to W_hh^T and fc weight (bf16 halves weight DMA on
    v5e/v6e); the folded gather table and all biases stay f32."""
    k_emb, k_ih, k_hh, k_fc = jax.random.split(key, 4)
    H = hidden_size
    L = loc_size

    # Embedding: N(0,1) (PyTorch default; untouched by init_weights).
    embedding = jax.random.normal(k_emb, (L, H), jnp.float32)

    # W_ih (4H, H): xavier_uniform_
    bound = float(jnp.sqrt(6.0 / (H + 4 * H)))
    w_ih = jax.random.uniform(k_ih, (4 * H, H), jnp.float32, -bound, bound)

    # W_hh (4H, H): orthogonal_
    a = jax.random.normal(k_hh, (4 * H, H), jnp.float32)
    q, r = jnp.linalg.qr(a)
    w_hh = q * jnp.sign(jnp.diagonal(r))[None, :]

    # biases: constant 0 (b_ih + b_hh combined).
    b = jnp.zeros((1, 4 * H), jnp.float32)

    # fc_final: default weight uniform +-1/sqrt(H); bias zeroed by init_weights.
    fc_bound = 1.0 / float(jnp.sqrt(jnp.float32(H)))
    w_fc = jax.random.uniform(k_fc, (L, H), jnp.float32, -fc_bound, fc_bound)
    b_fc = jnp.zeros((1, L), jnp.float32)

    # Fold the embedding through the input weight: gather-of-row semantics are
    # identical to Embedding(x) @ W_ih^T (gate order i, f, g, o preserved).
    emb_wih_t = embedding @ w_ih.T                     # (L, 4H)

    return {
        "emb_wih_t": emb_wih_t.astype(jnp.float32),    # (L, 4H) gather table
        "whh_t": w_hh.T.astype(param_dtype),           # (H, 4H)
        "b": b,                                        # (1, 4H)
        "wfc_t": w_fc.T.astype(param_dtype),           # (H, L)
        "bfc": b_fc,                                   # (1, L)
        "raw": {                                       # unfolded, for reference
            "embedding": embedding, "w_ih": w_ih, "w_hh": w_hh,
            "b": b, "w_fc": w_fc, "b_fc": b_fc,
        },
    }


# ------------------------------- reference ----------------------------------

def reference_step(current_seq, h, c, raw):
    x = raw["embedding"][current_seq]                                    # (B, H)
    gates = x @ raw["w_ih"].T + h @ raw["w_hh"].T + raw["b"]             # (B, 4H)
    H = h.shape[1]
    i_g = jax.nn.sigmoid(gates[:, 0 * H:1 * H])
    f_g = jax.nn.sigmoid(gates[:, 1 * H:2 * H])
    g_g = jnp.tanh(gates[:, 2 * H:3 * H])
    o_g = jax.nn.sigmoid(gates[:, 3 * H:4 * H])
    c_new = f_g * c + i_g * g_g
    h_new = o_g * jnp.tanh(c_new)
    y = h_new @ raw["w_fc"].T + raw["b_fc"]
    return y, h_new, c_new


def reference_seq(tokens, h, c, raw):
    ys = []
    for t in range(tokens.shape[0]):
        y, h, c = reference_step(tokens[t], h, c, raw)
        ys.append(y)
    return jnp.stack(ys, axis=0), h, c


# --------------------------------- main --------------------------------------

if __name__ == "__main__":
    B = 8            # batch
    H = 32           # hidden_size  (4H = 128 -> one full f32 vreg row per token)
    LOC = 128        # loc_size (output vocabulary)
    T = 6            # fused decode steps

    key = jax.random.PRNGKey(0)
    k_params, k_seq, k_h, k_c, k_tok = jax.random.split(key, 5)

    params = make_params(k_params, LOC, H)
    current_seq = jax.random.randint(k_seq, (B,), 0, LOC, dtype=jnp.int32)
    h2 = jax.random.normal(k_h, (1, B, H), jnp.float32) * 0.1
    c2 = jax.random.normal(k_c, (1, B, H), jnp.float32) * 0.1
    tokens = jax.random.randint(k_tok, (T, B), 0, LOC, dtype=jnp.int32)

    # ---- single step (module forward semantics) ----
    y, (h_new, c_new) = decoder_model_batch_forward(current_seq, h2, c2, params)
    jax.block_until_ready((y, h_new, c_new))

    y_ref, h_ref, c_ref = reference_step(current_seq, h2.reshape(B, H),
                                         c2.reshape(B, H), params["raw"])
    assert y.shape == (1, B, LOC) and h_new.shape == (1, B, H) and c_new.shape == (1, B, H)
    assert jnp.allclose(y[0], y_ref, atol=1e-4, rtol=1e-4)
    assert jnp.allclose(h_new[0], h_ref, atol=1e-4, rtol=1e-4)
    assert jnp.allclose(c_new[0], c_ref, atol=1e-4, rtol=1e-4)

    # ---- fused multi-timestep decode (f32 weights) ----
    y_seq, (hT, cT) = decoder_model_batch_decode(tokens, h2, c2, params)
    jax.block_until_ready((y_seq, hT, cT))

    y_seq_ref, h_seq_ref, c_seq_ref = reference_seq(tokens, h2.reshape(B, H),
                                                    c2.reshape(B, H), params["raw"])
    assert y_seq.shape == (T, 1, B, LOC)
    assert jnp.allclose(y_seq[:, 0], y_seq_ref, atol=1e-4, rtol=1e-4)
    assert jnp.allclose(hT[0], h_seq_ref, atol=1e-4, rtol=1e-4)
    assert jnp.allclose(cT[0], c_seq_ref, atol=1e-4, rtol=1e-4)

    # ---- fused decode with bf16 weights (f32 state/accumulate), loose parity ----
    params_bf16 = make_params(k_params, LOC, H, param_dtype=jnp.bfloat16)
    y_bf, (h_bf, c_bf) = decoder_model_batch_decode(tokens, h2, c2, params_bf16)
    jax.block_until_ready((y_bf, h_bf, c_bf))
    assert jnp.allclose(y_bf[:, 0], y_seq_ref, atol=5e-2, rtol=5e-2)
    assert jnp.allclose(h_bf[0], h_seq_ref, atol=5e-2, rtol=5e-2)
    assert jnp.allclose(c_bf[0], c_seq_ref, atol=5e-2, rtol=5e-2)

    print("KERNEL_OK")
</pallas_src>

<mosaic_0001>
module attributes {stable_mosaic.version = 11 : i64} {
  func.func @decoder_step_kernel(%arg0: memref<8xi32, #tpu.memory_space<smem>>, %arg1: memref<128x128xf32, #tpu.memory_space<vmem>>, %arg2: memref<8x32xf32, #tpu.memory_space<vmem>>, %arg3: memref<8x32xf32, #tpu.memory_space<vmem>>, %arg4: memref<32x128xf32, #tpu.memory_space<vmem>>, %arg5: memref<1x128xf32, #tpu.memory_space<vmem>>, %arg6: memref<32x128xf32, #tpu.memory_space<vmem>>, %arg7: memref<1x128xf32, #tpu.memory_space<vmem>>, %arg8: memref<8x128xf32, #tpu.memory_space<vmem>>, %arg9: memref<8x32xf32, #tpu.memory_space<vmem>>, %arg10: memref<8x32xf32, #tpu.memory_space<vmem>>, %arg11: memref<8x128xf32, #tpu.memory_space<vmem>>) attributes {dimension_semantics = [], scalar_prefetch = 0 : i64, scratch_operands = 1 : i64, tpu.core_type = #tpu.core_type<tc>} {
    %c0 = arith.constant 0 : index
    %0 = memref.load %arg0[%c0] : memref<8xi32, #tpu.memory_space<smem>>
    %c0_i32 = arith.constant 0 : i32
    %c127_i32 = arith.constant 127 : i32
    %1 = arith.maxsi %c0_i32, %0 : i32
    %2 = arith.minsi %c127_i32, %1 : i32
    %3 = arith.index_cast %2 : i32 to index
    %c0_0 = arith.constant 0 : index
    %4 = vector.load %arg1[%3, %c0_0] : memref<128x128xf32, #tpu.memory_space<vmem>>, vector<1x128xf32>
    %c0_1 = arith.constant 0 : index
    %c0_2 = arith.constant 0 : index
    %5 = vector.load %arg11[%c0_1, %c0_2] : memref<8x128xf32, #tpu.memory_space<vmem>>, vector<1x128xf32>
    tpu.vector_store %arg11[%c0_1, %c0_2], %4 {strides = array<i32>} : memref<8x128xf32, #tpu.memory_space<vmem>>, vector<1x128xf32>,
    %c1 = arith.constant 1 : index
    %6 = memref.load %arg0[%c1] : memref<8xi32, #tpu.memory_space<smem>>
    %c0_i32_3 = arith.constant 0 : i32
    %c127_i32_4 = arith.constant 127 : i32
    %7 = arith.maxsi %c0_i32_3, %6 : i32
    %8 = arith.minsi %c127_i32_4, %7 : i32
    %9 = arith.index_cast %8 : i32 to index
    %c0_5 = arith.constant 0 : index
    %10 = vector.load %arg1[%9, %c0_5] : memref<128x128xf32, #tpu.memory_space<vmem>>, vector<1x128xf32>
    %c1_6 = arith.constant 1 : index
    %c0_7 = arith.constant 0 : index
    %11 = vector.load %arg11[%c1_6, %c0_7] : memref<8x128xf32, #tpu.memory_space<vmem>>, vector<1x128xf32>
    tpu.vector_store %arg11[%c1_6, %c0_7], %10 {strides = array<i32>} : memref<8x128xf32, #tpu.memory_space<vmem>>, vector<1x128xf32>,
    %c2 = arith.constant 2 : index
    %12 = memref.load %arg0[%c2] : memref<8xi32, #tpu.memory_space<smem>>
    %c0_i32_8 = arith.constant 0 : i32
    %c127_i32_9 = arith.constant 127 : i32
    %13 = arith.maxsi %c0_i32_8, %12 : i32
    %14 = arith.minsi %c127_i32_9, %13 : i32
    %15 = arith.index_cast %14 : i32 to index
    %c0_10 = arith.constant 0 : index
    %16 = vector.load %arg1[%15, %c0_10] : memref<128x128xf32, #tpu.memory_space<vmem>>, vector<1x128xf32>
    %c2_11 = arith.constant 2 : index
    %c0_12 = arith.constant 0 : index
    %17 = vector.load %arg11[%c2_11, %c0_12] : memref<8x128xf32, #tpu.memory_space<vmem>>, vector<1x128xf32>
    tpu.vector_store %arg11[%c2_11, %c0_12], %16 {strides = array<i32>} : memref<8x128xf32, #tpu.memory_space<vmem>>, vector<1x128xf32>,
    %c3 = arith.constant 3 : index
    %18 = memref.load %arg0[%c3] : memref<8xi32, #tpu.memory_space<smem>>
    %c0_i32_13 = arith.constant 0 : i32
    %c127_i32_14 = arith.constant 127 : i32
    %19 = arith.maxsi %c0_i32_13, %18 : i32
    %20 = arith.minsi %c127_i32_14, %19 : i32
    %21 = arith.index_cast %20 : i32 to index
    %c0_15 = arith.constant 0 : index
    %22 = vector.load %arg1[%21, %c0_15] : memref<128x128xf32, #tpu.memory_space<vmem>>, vector<1x128xf32>
    %c3_16 = arith.constant 3 : index
    %c0_17 = arith.constant 0 : index
    %23 = vector.load %arg11[%c3_16, %c0_17] : memref<8x128xf32, #tpu.memory_space<vmem>>, vector<1x128xf32>
    tpu.vector_store %arg11[%c3_16, %c0_17], %22 {strides = array<i32>} : memref<8x128xf32, #tpu.memory_space<vmem>>, vector<1x128xf32>,
    %c4 = arith.constant 4 : index
    %24 = memref.load %arg0[%c4] : memref<8xi32, #tpu.memory_space<smem>>
    %c0_i32_18 = arith.constant 0 : i32
    %c127_i32_19 = arith.constant 127 : i32
    %25 = arith.maxsi %c0_i32_18, %24 : i32
    %26 = arith.minsi %c127_i32_19, %25 : i32
    %27 = arith.index_cast %26 : i32 to index
    %c0_20 = arith.constant 0 : index
    %28 = vector.load %arg1[%27, %c0_20] : memref<128x128xf32, #tpu.memory_space<vmem>>, vector<1x128xf32>
    %c4_21 = arith.constant 4 : index
    %c0_22 = arith.constant 0 : index
    %29 = vector.load %arg11[%c4_21, %c0_22] : memref<8x128xf32, #tpu.memory_space<vmem>>, vector<1x128xf32>
    tpu.vector_store %arg11[%c4_21, %c0_22], %28 {strides = array<i32>} : memref<8x128xf32, #tpu.memory_space<vmem>>, vector<1x128xf32>,
    %c5 = arith.constant 5 : index
    %30 = memref.load %arg0[%c5] : memref<8xi32, #tpu.memory_space<smem>>
    %c0_i32_23 = arith.constant 0 : i32
    %c127_i32_24 = arith.constant 127 : i32
    %31 = arith.maxsi %c0_i32_23, %30 : i32
    %32 = arith.minsi %c127_i32_24, %31 : i32
    %33 = arith.index_cast %32 : i32 to index
    %c0_25 = arith.constant 0 : index
    %34 = vector.load %arg1[%33, %c0_25] : memref<128x128xf32, #tpu.memory_space<vmem>>, vector<1x128xf32>
    %c5_26 = arith.constant 5 : index
    %c0_27 = arith.constant 0 : index
    %35 = vector.load %arg11[%c5_26, %c0_27] : memref<8x128xf32, #tpu.memory_space<vmem>>, vector<1x128xf32>
    tpu.vector_store %arg11[%c5_26, %c0_27], %34 {strides = array<i32>} : memref<8x128xf32, #tpu.memory_space<vmem>>, vector<1x128xf32>,
    %c6 = arith.constant 6 : index
    %36 = memref.load %arg0[%c6] : memref<8xi32, #tpu.memory_space<smem>>
    %c0_i32_28 = arith.constant 0 : i32
    %c127_i32_29 = arith.constant 127 : i32
    %37 = arith.maxsi %c0_i32_28, %36 : i32
    %38 = arith.minsi %c127_i32_29, %37 : i32
    %39 = arith.index_cast %38 : i32 to index
    %c0_30 = arith.constant 0 : index
    %40 = vector.load %arg1[%39, %c0_30] : memref<128x128xf32, #tpu.memory_space<vmem>>, vector<1x128xf32>
    %c6_31 = arith.constant 6 : index
    %c0_32 = arith.constant 0 : index
    %41 = vector.load %arg11[%c6_31, %c0_32] : memref<8x128xf32, #tpu.memory_space<vmem>>, vector<1x128xf32>
    tpu.vector_store %arg11[%c6_31, %c0_32], %40 {strides = array<i32>} : memref<8x128xf32, #tpu.memory_space<vmem>>, vector<1x128xf32>,
    %c7 = arith.constant 7 : index
    %42 = memref.load %arg0[%c7] : memref<8xi32, #tpu.memory_space<smem>>
    %c0_i32_33 = arith.constant 0 : i32
    %c127_i32_34 = arith.constant 127 : i32
    %43 = arith.maxsi %c0_i32_33, %42 : i32
    %44 = arith.minsi %c127_i32_34, %43 : i32
    %45 = arith.index_cast %44 : i32 to index
    %c0_35 = arith.constant 0 : index
    %46 = vector.load %arg1[%45, %c0_35] : memref<128x128xf32, #tpu.memory_space<vmem>>, vector<1x128xf32>
    %c7_36 = arith.constant 7 : index
    %c0_37 = arith.constant 0 : index
    %47 = vector.load %arg11[%c7_36, %c0_37] : memref<8x128xf32, #tpu.memory_space<vmem>>, vector<1x128xf32>
    tpu.vector_store %arg11[%c7_36, %c0_37], %46 {strides = array<i32>} : memref<8x128xf32, #tpu.memory_space<vmem>>, vector<1x128xf32>,
    %c0_38 = arith.constant 0 : index
    %c0_39 = arith.constant 0 : index
    %48 = vector.load %arg2[%c0_38, %c0_39] : memref<8x32xf32, #tpu.memory_space<vmem>>, vector<8x32xf32>
    %c0_40 = arith.constant 0 : index
    %c0_41 = arith.constant 0 : index
    %49 = vector.load %arg3[%c0_40, %c0_41] : memref<8x32xf32, #tpu.memory_space<vmem>>, vector<8x32xf32>
    %c0_42 = arith.constant 0 : index
    %c0_43 = arith.constant 0 : index
    %50 = vector.load %arg11[%c0_42, %c0_43] : memref<8x128xf32, #tpu.memory_space<vmem>>, vector<8x128xf32>
    %c0_44 = arith.constant 0 : index
    %c0_45 = arith.constant 0 : index
    %51 = vector.load %arg4[%c0_44, %c0_45] : memref<32x128xf32, #tpu.memory_space<vmem>>, vector<32x128xf32>
    %cst = arith.constant dense<0.000000e+00> : vector<8x128xf32>
    %52 = tpu.matmul %48, %51, %cst {dimension_numbers = #tpu.dot_dimension_numbers<[1], [0], [0], [1], [0, 0, 1, 1], [], []>} : vector<8x32xf32>, vector<32x128xf32>, vector<8x128xf32> -> vector<8x128xf32>
    %53 = arith.addf %50, %52 : vector<8x128xf32>
    %c0_46 = arith.constant 0 : index
    %c0_47 = arith.constant 0 : index
    %54 = vector.load %arg5[%c0_46, %c0_47] : memref<1x128xf32, #tpu.memory_space<vmem>>, vector<1x128xf32>
    %55 = vector.broadcast %54 : vector<1x128xf32> to vector<8x128xf32>
    %56 = arith.addf %53, %55 : vector<8x128xf32>
    %57 = tpu.iota {dimensions = array<i32: 1>} : vector<8x128xi32>
    %c64_i32 = arith.constant 64 : i32
    %58 = vector.broadcast %c64_i32 : i32 to vector<8x128xi32>
    %59 = arith.cmpi sge, %57, %58 : vector<8x128xi32>
    %c96_i32 = arith.constant 96 : i32
    %60 = vector.broadcast %c96_i32 : i32 to vector<8x128xi32>
    %61 = arith.cmpi slt, %57, %60 : vector<8x128xi32>
    %62 = arith.andi %59, %61 : vector<8x128xi1>
    %63 = math.tanh %56 : vector<8x128xf32>
    %64 = arith.negf %56 : vector<8x128xf32>
    %65 = math.exp %64 : vector<8x128xf32>
    %cst_48 = arith.constant 1.000000e+00 : f32
    %66 = vector.broadcast %cst_48 : f32 to vector<8x128xf32>
    %67 = arith.addf %66, %65 : vector<8x128xf32>
    %68 = arith.divf %66, %67 : vector<8x128xf32>
    %69 = arith.select %62, %63, %68 : vector<8x128xi1>, vector<8x128xf32>
    %70 = vector.extract_strided_slice %69 {offsets = [0, 0], sizes = [8, 32], strides = [1, 1]} : vector<8x128xf32> to vector<8x32xf32>
    %71 = vector.extract_strided_slice %69 {offsets = [0, 32], sizes = [8, 32], strides = [1, 1]} : vector<8x128xf32> to vector<8x32xf32>
    %72 = vector.extract_strided_slice %69 {offsets = [0, 64], sizes = [8, 32], strides = [1, 1]} : vector<8x128xf32> to vector<8x32xf32>
    %73 = vector.extract_strided_slice %69 {offsets = [0, 96], sizes = [8, 32], strides = [1, 1]} : vector<8x128xf32> to vector<8x32xf32>
    %74 = arith.mulf %71, %49 : vector<8x32xf32>
    %75 = arith.mulf %70, %72 : vector<8x32xf32>
    %76 = arith.addf %74, %75 : vector<8x32xf32>
    %77 = math.tanh %76 : vector<8x32xf32>
    %78 = arith.mulf %73, %77 : vector<8x32xf32>
    %c0_49 = arith.constant 0 : index
    %c0_50 = arith.constant 0 : index
    %79 = vector.load %arg9[%c0_49, %c0_50] : memref<8x32xf32, #tpu.memory_space<vmem>>, vector<8x32xf32>
    tpu.vector_store %arg9[%c0_49, %c0_50], %78 {strides = array<i32>} : memref<8x32xf32, #tpu.memory_space<vmem>>, vector<8x32xf32>,
    %c0_51 = arith.constant 0 : index
    %c0_52 = arith.constant 0 : index
    %80 = vector.load %arg10[%c0_51, %c0_52] : memref<8x32xf32, #tpu.memory_space<vmem>>, vector<8x32xf32>
    tpu.vector_store %arg10[%c0_51, %c0_52], %76 {strides = array<i32>} : memref<8x32xf32, #tpu.memory_space<vmem>>, vector<8x32xf32>,
    %c0_53 = arith.constant 0 : index
    %c0_54 = arith.constant 0 : index
    %81 = vector.load %arg6[%c0_53, %c0_54] : memref<32x128xf32, #tpu.memory_space<vmem>>, vector<32x128xf32>
    %cst_55 = arith.constant dense<0.000000e+00> : vector<8x128xf32>
    %82 = tpu.matmul %78, %81, %cst_55 {dimension_numbers = #tpu.dot_dimension_numbers<[1], [0], [0], [1], [0, 0, 1, 1], [], []>} : vector<8x32xf32>, vector<32x128xf32>, vector<8x128xf32> -> vector<8x128xf32>
    %c0_56 = arith.constant 0 : index
    %c0_57 = arith.constant 0 : index
    %83 = vector.load %arg7[%c0_56, %c0_57] : memref<1x128xf32, #tpu.memory_space<vmem>>, vector<1x128xf32>
    %84 = vector.broadcast %83 : vector<1x128xf32> to vector<8x128xf32>
    %85 = arith.addf %82, %84 : vector<8x128xf32>
    %c0_58 = arith.constant 0 : index
    %c0_59 = arith.constant 0 : index
    %86 = vector.load %arg8[%c0_58, %c0_59] : memref<8x128xf32, #tpu.memory_space<vmem>>, vector<8x128xf32>
    tpu.vector_store %arg8[%c0_58, %c0_59], %85 {strides = array<i32>} : memref<8x128xf32, #tpu.memory_space<vmem>>, vector<8x128xf32>,
    return
  }
}

</mosaic_0001>

<bundles_post_ra>
// kernel: _forward_impl.1
= control target key start
LH: loop header
LB: loop body
LE: loop exit
PB: predicated region body
PF: predicated region fallthrough
CT: control target
= control target key end

     0   :  { %16 = vsyncpa [#allocation6], 0  ;;  %s763_s0 = inlined_call_operand.vmem [shape: s32[8], index: 0, kind: input, shape index: {}]   ;;  %s764_s1 = inlined_call_operand.hbm [shape: f32[128,128], index: 1, kind: input, shape index: {}]   ;;  %s765_s2 = inlined_call_operand.vmem [shape: f32[8,32], index: 2, kind: input, shape index: {}, may-alias: {2,9}]   ;;  %s766_s3 = inlined_call_operand.vmem [shape: f32[8,32], index: 3, kind: input, shape index: {}, may-alias: {3,10}]   ;;  %s767_s4 = inlined_call_operand.vmem [shape: f32[32,128], index: 4, kind: input, shape index: {}]   ;;  %s768_s5 = inlined_call_operand.vmem [shape: f32[1,128], index: 5, kind: input, shape index: {}]   ;;  %s769_s6 = inlined_call_operand.hbm [shape: f32[32,128], index: 6, kind: input, shape index: {}]   ;;  %s770_s7 = inlined_call_operand.hbm [shape: f32[1,128], index: 7, kind: input, shape index: {}]   ;;  %s771_s8 = inlined_call_operand.hbm [shape: f32[8,128], index: 8, kind: output, shape index: {0}]   ;;  %s772_s9 = inlined_call_operand.vmem [shape: f32[8,32], index: 9, kind: output, shape index: {1}, may-alias: {2,9}]   ;;  %s773_s10 = inlined_call_operand.vmem [shape: f32[8,32], index: 10, kind: output, shape index: {2}, may-alias: {3,10}]  }
   0x1   :  { %17 = vsyncpa [#allocation4], 0 }
   0x2   :  { %18 = vsyncpa [#allocation9], 0 }
   0x3   :  { %19 = vsyncpa [#allocation5], 0  ;;  %s26_s15 = sshll.u32 %s763_s0, 4  ;;  %s620_s16 = smov [#allocation8]   ;;  %s27_s15 = int_to_ptr.vmem [resolvable:$true] %s26_s15 }
   0x4   :  { %s55_s17 = sshll.u32 %s620_s16, 4  ;;  %s56_s17 = int_to_ptr.vmem [resolvable:$true] %s55_s17 }
   0x5   :  { %s528_s18 = scalar_lea.vmem %s56_s17, 512  ;;  %p533_p1 = scmp.lt.s32.totalorder %s56_s17, %s56_s17 }
   0x6   :  { %p529_p0 = scmp.ne.s32.totalorder %s56_s17, %s528_s18  ;;  %p534_p2 = scmp.lt.s32.totalorder %s528_s18, %s528_s18 }
   0x8   :  { %p535_p3 = por %p534_p2, %p533_p1 }
   0xa   :  { %p536_p4 = pnand %p535_p3, %p529_p0 }
   0xc   :  { %539 = shalt.err (!%p536_p4)
}
   0xd   :  { %s621_s19 = smov 128   ;;  %s622_s20 = smov 8  }
   0xe   :  { %61 = dma.hbm_to_vmem [thread:$0]  %s769_s6, 512, %s56_s17, [#allocation9], %s621_s19, %s621_s19, %s622_s20  }
   0xf   :  { %s540_s23 = scalar_lea.vmem %s27_s15, 16  ;;  %p545_p6 = scmp.lt.s32.totalorder %s27_s15, %s27_s15 }
  0x10   :  { %p541_p5 = scmp.ne.s32.totalorder %s27_s15, %s540_s23  ;;  %p546_p7 = scmp.lt.s32.totalorder %s540_s23, %s540_s23 }
  0x12   :  { %p547_p8 = por %p546_p7, %p545_p6 }
  0x14   :  { %p548_p9 = pnand %p547_p8, %p541_p5 }
  0x16   :  { %551 = shalt.err (!%p548_p9)
}
  0x17   :  { %s623_s0 = smov [#allocation3]   ;;  %s624_s24 = smov [#allocation7]  }
  0x18   :  { %29 = dma.vmem_to_smem %s27_s15, 16, %s623_s0, [#allocation6]  }
  0x19   :  { %s35_s25 = sshll.u32 %s624_s24, 4  ;;  %s625_s26 = smov [#allocation10]   ;;  %s36_s25 = int_to_ptr.vmem [resolvable:$true] %s35_s25 }
  0x1a   :  { %s68_s27 = sshll.u32 %s625_s26, 4  ;;  %s560_s28 = scalar_lea.vmem %s36_s25, 2048  ;;  %s69_s27 = int_to_ptr.vmem [resolvable:$true] %s68_s27 }
  0x1b   :  { %p561_p10 = scmp.ne.s32.totalorder %s36_s25, %s560_s28  ;;  %p565_p11 = scmp.lt.s32.totalorder %s36_s25, %s36_s25 }
  0x1c   :  { %p566_p12 = scmp.lt.s32.totalorder %s560_s28, %s560_s28 }
  0x1e   :  { %p567_p13 = por %p566_p12, %p565_p11 }
  0x20   :  { %p568_p0 = pnand %p567_p13, %p561_p10 }
  0x22   :  { %571 = shalt.err (!%p568_p0)
}
  0x23   :  { %41 = dma.hbm_to_vmem [thread:$0]  %s764_s1, 2048, %s36_s25, [#allocation4], %s621_s19, %s621_s19, %s622_s20  }
  0x24   :  { %s580_s30 = scalar_lea.vmem %s69_s27, 16  ;;  %s584_s11 = scalar_lea.vmem %s69_s27, 32 }
  0x25   :  { %p581_p1 = scmp.ne.s32.totalorder %s69_s27, %s580_s30  ;;  %p585_p2 = scmp.lt.s32.totalorder %s69_s27, %s69_s27 }
  0x26   :  { %p586_p3 = scmp.lt.s32.totalorder %s584_s11, %s580_s30 }
  0x28   :  { %p587_p4 = por %p586_p3, %p585_p2 }
  0x2a   :  { %p588_p5 = pnand %p587_p4, %p581_p1 }
  0x2c   :  { %591 = shalt.err (!%p588_p5)
}
  0x2d   :  { %71 = dma.hbm_to_vmem [thread:$0]  %s770_s7, 16, %s69_s27, [#allocation9]  }
  0x2e   :  { %612 = dma.done.wait [#allocation6], 16  }
  0x2f   :  { %613 = vsyncadd [#allocation6], 4294967280 }
  0x30   :  { %614 = dma.done.wait [#allocation4], 2048  }
  0x31   :  { %615 = vsyncadd [#allocation4], 4294965248 }
  0x32   :  { %616 = dma.done.wait [#allocation9], 528  }
  0x33   :  { %617 = vsyncadd [#allocation9], 4294966768 }
  0x34   :  { %84 = sfence }
  0x35   :  { %v155_v0 = vld [vmem:[%s767_s4 + $0x18] sm:$0xff]  ;;  %v626_v1 = vmov 0.0   ;;  %v154_v2 = vld [vmem:[%s767_s4 + $0x10] sm:$0xff]  ;;  %vm627_vm0 = vmmov 0   ;;  %s85_s7 = sld [smem:[#allocation3]]  ;;  %v153_v3 = vld [vmem:[%s767_s4 + $0x8] sm:$0xff]  ;;  %v239_v23 = vlaneseq }
  0x36   :  { %478 = vmatprep.subr.mxu0 %v626_v1  ;;  %486 = vmatprep.mubr.msk.f32.mxu0 %vm627_vm0, %v626_v1  ;;  %s405_s17 = sld [smem:[#allocation3 + $0x1]]  ;;  %v152_v4 = vld [vmem:[%s767_s4] sm:$0xff]  ;;  %vm156_vm1 = vcmask 261120   ;;  %s628_s16 = smov 64   ;;  %v285_v36 = vld [vmem:[#allocation8 + $0x10] sm:$0xff]  ;;  %v284_v37 = vld [vmem:[#allocation8 + $0x8] sm:$0xff] }
  0x37   :  { %479 = vmatpush3.msra.mxu0 %v155_v0  ;;  %489 = vmatprep.subr.mxu1 %v626_v1  ;;  %s712_s20 = sld [smem:[#allocation3 + $0x2]]  ;;  %v149_v5 = vld [vmem:[%s765_s2] sm:$0xff]  ;;  %v240_v24 = vand.u32 127, %v239_v23  ;;  %v283_v38 = vld [vmem:[#allocation8] sm:$0xff]  ;;  %s631_s22 = smov [#allocation11]  }
  0x38   :  { %480 = vmatprep.subr.mxu0 %v626_v1  ;;  %497 = vmatprep.mubr.msk.f32.mxu1 %vm627_vm0, %v626_v1  ;;  %s715_s21 = sld [smem:[#allocation3 + $0x3]]  ;;  %v448_v16 = vld [vmem:[%s768_s5] ss:$0 sm:$0xff]  ;;  %v450_v44 = vld [vmem:[#allocation10] ss:$0 sm:$0xff]  ;;  %s373_s23 = sshll.u32 %s631_s22, 4  ;;  %s374_s23 = int_to_ptr.vmem [resolvable:$true] %s373_s23 }
  0x39   :  { %481 = vmatpush3.msra.mxu0 %v154_v2  ;;  %s721_s0 = sld [smem:[#allocation3 + $0x4]]  ;;  %vm241_vm2 = vcmp.ge.s32.totalorder %v240_v24, 64  ;;  %vm242_vm3 = vcmp.lt.s32.totalorder %v240_v24, 96  ;;  %v150_v28 = vld [vmem:[%s766_s3] sm:$0xff]  ;;  %s630_s3 = smov 96  }
  0x3a   :  { %482 = vmatprep.subr.mxu0 %v626_v1  ;;  %s726_s26 = sld [smem:[#allocation3 + $0x5]]  ;;  %vm243_vm4 = vmand %vm241_vm2, %vm242_vm3  ;;  %v286_v35 = vld [vmem:[#allocation8 + $0x18] sm:$0xff] }
  0x3b   :  { %483 = vmatpush3.msra.mxu0 %v153_v3  ;;  %p86_p6 = scmp.gt.s32.totalorder %s85_s7, 0  ;;  %p400_p7 = scmp.lt.s32.totalorder %s85_s7, 127  ;;  %490 = vmatpush3.msra.mxu1 %v286_v35 }
  0x3c   :  { %484 = vmatprep.subr.mxu0 %v626_v1  ;;  %p94_p8 = scmp.gt.s32.totalorder %s405_s17, 0  ;;  %p406_p9 = scmp.lt.s32.totalorder %s405_s17, 127  ;;  %491 = vmatprep.subr.mxu1 %v626_v1 }
  0x3d   :  { %485 = vmatpush3.msra.mxu0 %v152_v4  ;;  %s775_s7 = smov (!%p86_p6, %s85_s7), 0  ;;  %p102_p10 = scmp.gt.s32.totalorder %s712_s20, 0  ;;  %492 = vmatpush3.msra.mxu1 %v285_v36 }
  0x3e   :  { %487 = vmatmul.mubr.msk.f32.vlgmr.msra.gmra.mxu0 %vm156_vm1, %v149_v5  ;;  %s777_s17 = smov (!%p94_p8, %s405_s17), 0  ;;  %s779_s7 = smov (!%p400_p7, %s775_s7), 127  ;;  %493 = vmatprep.subr.mxu1 %v626_v1 }
  0x3f   :  { %s781_s17 = smov (!%p406_p9, %s777_s17), 127  ;;  %s90_s2 = scalar_lea.vmem [#allocation7], %s779_s7  ;;  %494 = vmatpush3.msra.mxu1 %v284_v37 }
  0x40   :  { %v91_v6 = vld [vmem:[%s90_s2] sm:$0x1]  ;;  %p412_p11 = scmp.lt.s32.totalorder %s712_s20, 127  ;;  %s98_s4 = scalar_lea.vmem [#allocation7], %s781_s17  ;;  %495 = vmatprep.subr.mxu1 %v626_v1 }
  0x41   :  { %92 = vst [vmem:[#allocation2] sm:$0x1] %v91_v6  ;;  %v99_v7 = vld [vmem:[%s98_s4] sm:$0x1]  ;;  %s783_s20 = smov (!%p102_p10, %s712_s20), 0  ;;  %p110_p12 = scmp.gt.s32.totalorder %s715_s21, 0  ;;  %496 = vmatpush3.msra.mxu1 %v283_v38 }
  0x42   :  { %100 = vst [vmem:[#allocation2 + $0x1] sm:$0x1] %v99_v7  ;;  %p418_p13 = scmp.lt.s32.totalorder %s715_s21, 127  ;;  %s785_s20 = smov (!%p412_p11, %s783_s20), 127 }
  0x43   :  { %s787_s21 = smov (!%p110_p12, %s715_s21), 0  ;;  %p118_p0 = scmp.gt.s32.totalorder %s721_s0, 0 }
  0x44   :  { %s106_s27 = scalar_lea.vmem [#allocation7], %s785_s20  ;;  %s789_s21 = smov (!%p418_p13, %s787_s21), 127 }
  0x45   :  { %v107_v8 = vld [vmem:[%s106_s27] sm:$0x1]  ;;  %s119_s28 = scalar_select %p118_p0, %s721_s0, 0 }
  0x46   :  { %108 = vst [vmem:[#allocation2 + $0x2] sm:$0x1] %v107_v8  ;;  %p424_p1 = scmp.lt.s32.totalorder %s721_s0, 127  ;;  %s114_s6 = scalar_lea.vmem [#allocation7], %s789_s21 }
  0x47   :  { %v115_v9 = vld [vmem:[%s114_s6] sm:$0x1]  ;;  %p126_p2 = scmp.gt.s32.totalorder %s726_s26, 0  ;;  %p430_p3 = scmp.lt.s32.totalorder %s726_s26, 127 }
  0x48   :  { %116 = vst [vmem:[#allocation2 + $0x3] sm:$0x1] %v115_v9  ;;  %s791_s28 = smov (!%p424_p1, %s119_s28), 127  ;;  %s435_s29 = sld [smem:[#allocation3 + $0x6]] }
  0x49   :  { %s793_s26 = smov (!%p126_p2, %s726_s26), 0  ;;  %s122_s30 = scalar_lea.vmem [#allocation7], %s791_s28 }
  0x4a   :  { %v123_v10 = vld [vmem:[%s122_s30] sm:$0x1]  ;;  %s795_s26 = smov (!%p430_p3, %s793_s26), 127  ;;  %s441_s11 = sld [smem:[#allocation3 + $0x7]] }
  0x4b   :  { %124 = vst [vmem:[#allocation2 + $0x4] sm:$0x1] %v123_v10  ;;  %s130_s12 = scalar_lea.vmem [#allocation7], %s795_s26  ;;  %s629_s17 = smov 32  }
  0x4c   :  { %v131_v11 = vld [vmem:[%s130_s12] sm:$0x1]  ;;  %s592_s0 = scalar_lea.vmem %s374_s23, 128  ;;  %p597_p9 = scmp.lt.s32.totalorder %s374_s23, %s374_s23 }
  0x4d   :  { %132 = vst [vmem:[#allocation2 + $0x5] sm:$0x1] %v131_v11  ;;  %p593_p8 = scmp.ne.s32.totalorder %s374_s23, %s592_s0  ;;  %p598_p10 = scmp.lt.s32.totalorder %s592_s0, %s592_s0 }
  0x4e   :  { %p134_p4 = scmp.gt.s32.totalorder %s435_s29, 0  ;;  %p436_p5 = scmp.lt.s32.totalorder %s435_s29, 127 }
  0x4f   :  { %p599_p11 = por %p598_p10, %p597_p9 }
  0x50   :  { %s797_s29 = smov (!%p134_p4, %s435_s29), 0  ;;  %p142_p6 = scmp.gt.s32.totalorder %s441_s11, 0 }
  0x51   :  { %p442_p7 = scmp.lt.s32.totalorder %s441_s11, 127  ;;  %s799_s29 = smov (!%p436_p5, %s797_s29), 127 }
  0x52   :  { %s801_s11 = smov (!%p142_p6, %s441_s11), 0  ;;  %s138_s13 = scalar_lea.vmem [#allocation7], %s799_s29 }
  0x53   :  { %v139_v12 = vld [vmem:[%s138_s13] sm:$0x1]  ;;  %s803_s11 = smov (!%p442_p7, %s801_s11), 127  ;;  %p600_p12 = pnand %p599_p11, %p593_p8 }
  0x54   :  { %140 = vst [vmem:[#allocation2 + $0x6] sm:$0x1] %v139_v12  ;;  %s146_s1 = scalar_lea.vmem [#allocation7], %s803_s11 }
  0x55   :  { %v147_v13 = vld [vmem:[%s146_s1] sm:$0x1] }
  0x56   :  { %148 = vst [vmem:[#allocation2 + $0x7] sm:$0x1] %v147_v13 }
  0x5d   :  { %v151_v14 = vld [vmem:[#allocation2] sm:$0xff] }
  0xfe   :  { %v226_v15 = vpop.f32.mrf.mxu0 }
  0xff   :  { %v230_v17 = vadd.f32 %v226_v15, %v151_v14 }
 0x100   :  { %v488_v18 = vpop.f32.mrf.mxu0 }
 0x101   :  { %v238_v19 = vadd.f32 %v448_v16, %v230_v17 }
 0x103   :  { %v449_v20 = vmul.f32 -1.442695, %v238_v19 }
 0x105   :  { %512 = vpow2.f32 %v449_v20 }
 0x106   :  { %514 = vtanh.f32 %v238_v19 }
 0x112   :  { %v513_v21 = vpop.eup %512 }
 0x113   :  { %v248_v22 = vadd.f32 1.0, %v513_v21  ;;  %v515_v25 = vpop.eup %514 }
 0x115   :  { %516 = vrcp.f32 %v248_v22 }
 0x122   :  { %v517_v26 = vpop.eup %516 }
 0x123   :  { %v251_v27 = vsel %vm243_vm4, %v515_v25, %v517_v26 }
 0x124   :  { %258 = vrot.lane.b32.xlu0 %v251_v27, %s628_s16 }
 0x128   :  { %253 = vrot.lane.b32.xlu0 %v150_v28, %s629_s17 }
 0x196   :  { %v259_v29 = vpop.permute.xlu0 %258 }
 0x197   :  { %v261_v30 = vmul.f32 %v259_v29, %v251_v27 }
 0x199   :  { %263 = vrot.lane.b32.xlu1 %v261_v30, %s629_s17 }
 0x19a   :  { %v254_v31 = vpop.permute.xlu0 %253 }
 0x19b   :  { %v256_v32 = vmul.f32 %v254_v31, %v251_v27 }
 0x20b   :  { %v264_v33 = vpop.permute.xlu1 %263 }
 0x20c   :  { %v266_v34 = vadd.f32 %v264_v33, %v256_v32 }
 0x20e   :  { %518 = vtanh.f32 %v266_v34 }
 0x21b   :  { %v519_v39 = vpop.eup %518 }
 0x21c   :  { %269 = vrot.lane.b32.xlu1 %v519_v39, %s628_s16 }
 0x220   :  { %279 = vrot.lane.b32.xlu1 %v266_v34, %s630_s3 }
 0x28e   :  { %v270_v40 = vpop.permute.xlu1 %269 }
 0x28f   :  { %v272_v41 = vmul.f32 %v270_v40, %v251_v27 }
 0x291   :  { %274 = vrot.lane.b32.xlu0 %v272_v41, %s629_s17 }
 0x292   :  { %v280_v42 = vpop.permute.xlu1 %279 }
 0x293   :  { %282 = vst.msk [vmem:[%s773_s10] sm:$0xff] %vm156_vm1, %v280_v42 }
 0x303   :  { %v275_v43 = vpop.permute.xlu0 %274 }
 0x304   :  { %277 = vst.msk [vmem:[%s772_s9] sm:$0xff] %vm156_vm1, %v275_v43  ;;  %498 = vmatmul.mubr.msk.f32.vlgmr.msra.gmra.mxu1 %vm156_vm1, %v275_v43 }
 0x3c4   :  { %v362_v45 = vpop.f32.mrf.mxu1 }
 0x3c5   :  { %v363_v46 = vadd.f32 %v450_v44, %v362_v45 }
 0x3c6   :  { %v499_v47 = vpop.f32.mrf.mxu1 }
 0x3c7   :  { %366 = vst [vmem:[#allocation11] sm:$0xff] %v363_v46 }
 0x3c8   :  { %603 = shalt.err (!%p600_p12)
}
 0x3c9   :  { %376 = dma.vmem_to_hbm [thread:$0]  %s374_s23, 128, %s771_s8, [#allocation5]  }
 0x3ca   :  { %618 = dma.done.wait [#allocation5], 128  }
 0x3cb   :  { %619 = vsyncadd [#allocation5], 4294967168 }
 0x3cc   :  { %388 = vsyncpa [#allocation4], 1 }
 0x3cd   :  { %389 = vsyncpa [#allocation9], 1 }
 0x3ce   :  { %390 = vsyncpa [#allocation5], 1 }
 0x3cf   :  { %391 = vsyncpa [#allocation6], 1 }

</bundles_post_ra>
